<compile_context>
chip_gen: v6e
topology: v6e:2x2x1
jax: 0.10.0
libtpu: 0.0.40
codegen_flags: <defaults>
</compile_context>

<pallas_src>
import functools

import jax
import jax.numpy as jnp
from jax.experimental import pallas as pl
from jax.experimental.pallas import tpu as pltpu

NUM_GROUPS = 32
EPS = 1e-6


# ----------------------------------------------------------------------------
# helpers
# ----------------------------------------------------------------------------
def _pick_tile(n, cap=512):
    """Largest token-tile <= cap that divides n and is a multiple of 8."""
    if n <= cap:
        return n
    for t in range(cap, 7, -1):
        if t % 8 == 0 and n % t == 0:
            return t
    for t in range(cap + 8, min(n, 4 * cap) + 1, 8):
        if n % t == 0:
            return t
    return n  # TODO(synk): pad N + mask softmax/stats for pathological (prime-ish) sizes


def _vmem_capacity_bytes():
    """Per-TensorCore VMEM capacity; conservative 64 MiB (v7x) if unknown."""
    try:
        cap = int(pltpu.get_tpu_info().vmem_capacity_bytes)
        if cap > 0:
            return cap
    except Exception:
        pass
    return 64 * 2**20


def _use_bf16_exp():
    """bf16 EUP exists on v6e / v7x; keep f32 exp on v5e and older."""
    try:
        kind = jax.devices()[0].device_kind.lower()
    except Exception:
        return False
    return ("v6" in kind) or ("v7" in kind) or ("7x" in kind)


def _const_spec(block_shape):
    """BlockSpec for a grid-invariant operand; single-buffered when supported."""
    index_map = lambda *args: (0,) * len(block_shape)
    try:
        return pl.BlockSpec(block_shape, index_map, pipeline_mode=pl.Buffered(1))
    except Exception:
        return pl.BlockSpec(block_shape, index_map)


def _stage3_resident_plan(N, C, tq, budget):
    """Decide whether K/V fit VMEM per batch row; return (fits, kv_inner_tile)."""
    tkv = None
    for cand in (1024, 896, 768, 640, 512, 384, 256, 128):  # 128-aligned inner tiles
        if cand <= N and N % cand == 0:
            tkv = cand
            break
    if tkv is None:
        tkv = N                                      # single (whole-sequence) key tile
    kv_bytes = 2 * 2 * (N * C * 2)                   # K+V resident, bf16, double-buffered
    step_bytes = (2 * tq * C * (2 + 2 + 4)           # x(bf16)+q(bf16)+out(f32), double-buffered
                  + 2 * tq * tkv * 4                 # logits + exp temporaries (f32)
                  + tq * C * 4 + 2 * tq * 4          # acc / m / l scratch
                  + C * C * 2 + C * 4)               # wp + bp (single-buffered)
    need = kv_bytes + step_bytes + (6 << 20)         # headroom for Mosaic internal scratch
    return need <= budget, tkv


def _softmax_update(s, m_prev, use_bf16_exp):
    """Online-softmax tile update.  Returns (m_new, alpha, p_bf16, psum_f32)."""
    m_new = jnp.maximum(m_prev, jnp.max(s, axis=-1, keepdims=True))
    alpha = jnp.exp(m_prev - m_new)                               # f32, (tq, 1)
    if use_bf16_exp:
        p = jnp.exp((s - m_new).astype(jnp.bfloat16))             # bf16 EUP (v6e/v7x)
        psum = jnp.sum(p, axis=-1, keepdims=True, dtype=jnp.float32)
    else:
        pf = jnp.exp(s - m_new)                                   # f32 EUP (v5e & older)
        psum = jnp.sum(pf, axis=-1, keepdims=True)
        p = pf.astype(jnp.bfloat16)
    return m_new, alpha, p, psum


# ----------------------------------------------------------------------------
# stage 1: per-batch token moments (tiled reduction; group pooling done in JAX)
# ----------------------------------------------------------------------------
def _stats_kernel(x_ref, sums_ref, s_sc):
    ti = pl.program_id(1)

    @pl.when(ti == 0)
    def _():
        s_sc[...] = jnp.zeros(s_sc.shape, s_sc.dtype)

    x = x_ref[0]                                              # (t, C) f32
    s1 = jnp.sum(x, axis=0, keepdims=True)                    # (1, C)
    s2 = jnp.sum(x * x, axis=0, keepdims=True)                # (1, C)
    s_sc[...] += jnp.concatenate([s1, s2], axis=0)            # (2, C)

    @pl.when(ti == pl.num_programs(1) - 1)
    def _():
        sums_ref[0] = s_sc[...]                               # raw [sum(x); sum(x^2)]


# ----------------------------------------------------------------------------
# stage 2: normalize (precomputed per-batch scale/shift) + fused QKV projection
# ----------------------------------------------------------------------------
def _norm_qkv_kernel(x_ref, ss_ref, wqkv_ref, bqkv_ref, q_ref, k_ref, v_ref, *, channels):
    c = channels
    x = x_ref[0]                                              # (t, C) f32
    scale = ss_ref[0, 0:1, :]                                 # inv * gamma
    shift = ss_ref[0, 1:2, :]                                 # beta - mean * inv * gamma
    hn = x * scale + shift                                    # f32 norm math

    qkv = jnp.dot(hn.astype(jnp.bfloat16), wqkv_ref[...],
                  preferred_element_type=jnp.float32) + bqkv_ref[...]  # (t, 3C) f32

    q_ref[0] = qkv[:, 0:c].astype(q_ref.dtype)        # q already scaled by C^-0.5
    k_ref[0] = qkv[:, c:2 * c].astype(k_ref.dtype)
    v_ref[0] = qkv[:, 2 * c:3 * c].astype(v_ref.dtype)


# ----------------------------------------------------------------------------
# stage 3a: resident-K/V flash attention (K/V held in VMEM per batch row,
#           in-kernel loop over key tiles) + output projection + residual
# ----------------------------------------------------------------------------
def _flash_resident_kernel(x_ref, q_ref, k_ref, v_ref, wp_ref, bp_ref, o_ref,
                           m_sc, l_sc, acc_sc, *, kv_tile, num_kv_tiles, use_bf16_exp):
    q = q_ref[0]                                              # (tq, C) bf16, pre-scaled

    m_sc[...] = jnp.full(m_sc.shape, -jnp.inf, m_sc.dtype)
    l_sc[...] = jnp.zeros(l_sc.shape, l_sc.dtype)
    acc_sc[...] = jnp.zeros(acc_sc.shape, acc_sc.dtype)

    def step(k, v):
        # QK^T: contract over the C dims (no explicit K transpose materialized).
        s = jax.lax.dot_general(q, k, (((1,), (1,)), ((), ())),
                                preferred_element_type=jnp.float32)      # (tq, tk)
        m_prev = m_sc[...]
        m_new, alpha, p, psum = _softmax_update(s, m_prev, use_bf16_exp)
        l_sc[...] = alpha * l_sc[...] + psum
        acc_sc[...] = alpha * acc_sc[...] + jnp.dot(
            p, v, preferred_element_type=jnp.float32)
        m_sc[...] = m_new

    if num_kv_tiles == 1:
        step(k_ref[0], v_ref[0])
    else:
        @pl.loop(0, num_kv_tiles)
        def _(i):
            off = pl.multiple_of(i * kv_tile, kv_tile)
            step(k_ref[0, pl.ds(off, kv_tile), :],
                 v_ref[0, pl.ds(off, kv_tile), :])

    attn = acc_sc[...] * pl.reciprocal(l_sc[...], approx=True)
    proj = jnp.dot(attn.astype(jnp.bfloat16), wp_ref[...],
                   preferred_element_type=jnp.float32) + bp_ref[...]
    o_ref[0] = (x_ref[0].astype(jnp.float32) + proj).astype(o_ref.dtype)


# ----------------------------------------------------------------------------
# stage 3b: streamed fallback (key tiles re-fetched; used when K/V don't fit)
# ----------------------------------------------------------------------------
def _flash_streamed_kernel(x_ref, q_ref, k_ref, v_ref, wp_ref, bp_ref, o_ref,
                           m_sc, l_sc, acc_sc, *, use_bf16_exp):
    ki = pl.program_id(2)

    @pl.when(ki == 0)
    def _():
        m_sc[...] = jnp.full(m_sc.shape, -jnp.inf, m_sc.dtype)
        l_sc[...] = jnp.zeros(l_sc.shape, l_sc.dtype)
        acc_sc[...] = jnp.zeros(acc_sc.shape, acc_sc.dtype)

    q = q_ref[0]
    k = k_ref[0]
    v = v_ref[0]
    s = jax.lax.dot_general(q, k, (((1,), (1,)), ((), ())),
                            preferred_element_type=jnp.float32)
    m_prev = m_sc[...]
    m_new, alpha, p, psum = _softmax_update(s, m_prev, use_bf16_exp)
    l_sc[...] = alpha * l_sc[...] + psum
    acc_sc[...] = alpha * acc_sc[...] + jnp.dot(p, v, preferred_element_type=jnp.float32)
    m_sc[...] = m_new

    @pl.when(ki == pl.num_programs(2) - 1)
    def _():
        attn = acc_sc[...] * pl.reciprocal(l_sc[...], approx=True)
        proj = jnp.dot(attn.astype(jnp.bfloat16), wp_ref[...],
                       preferred_element_type=jnp.float32) + bp_ref[...]
        o_ref[0] = (x_ref[0].astype(jnp.float32) + proj).astype(o_ref.dtype)


# ----------------------------------------------------------------------------
# wrapper
# ----------------------------------------------------------------------------
def spatial_self_attention(x_nchw, params):
    """x_nchw: (B, C, H, W) float32. params: dict of weights (see init_params)."""
    B, C, H, W = x_nchw.shape
    N = H * W
    assert C % NUM_GROUPS == 0, "GroupNorm(32, C) requires C % 32 == 0"
    gs = C // NUM_GROUPS

    cap = _vmem_capacity_bytes()
    budget = int(0.70 * cap)          # ~45 MiB on v7x (64 MiB/TC), ~90 MiB on v5e/v6e
    use_bf16_exp = _use_bf16_exp()

    tq = _pick_tile(N, cap=512)
    assert N % tq == 0
    ntq = N // tq

    # NCHW -> (B, N, C) tokens (channels-last; 1x1 convs become matmuls)
    x_tok = jnp.transpose(x_nchw, (0, 2, 3, 1)).reshape(B, N, C).astype(jnp.float32)

    def wmat(w):  # (Cout, Cin, 1, 1) -> (Cin, Cout)
        return jnp.transpose(w[:, :, 0, 0], (1, 0)).astype(jnp.float32)

    scale_attn = float(C) ** (-0.5)
    wq = wmat(params["q_w"]) * scale_attn            # fold attention scale into q
    bq = params["q_b"].astype(jnp.float32) * scale_attn
    wk, bk = wmat(params["k_w"]), params["k_b"].astype(jnp.float32)
    wv, bv = wmat(params["v_w"]), params["v_b"].astype(jnp.float32)
    wqkv = jnp.concatenate([wq, wk, wv], axis=1).astype(jnp.bfloat16)       # (C, 3C)
    bqkv = jnp.concatenate([bq, bk, bv]).reshape(1, 3 * C).astype(jnp.float32)
    wp = wmat(params["proj_w"]).astype(jnp.bfloat16)                        # (C, C)
    bp = params["proj_b"].reshape(1, C).astype(jnp.float32)
    gamma = params["gn_weight"].astype(jnp.float32)
    beta = params["gn_bias"].astype(jnp.float32)

    # ---- stage 1: per-channel moments sum(x), sum(x^2) -> (B, 2, C) ----
    sums = pl.pallas_call(
        _stats_kernel,
        out_shape=jax.ShapeDtypeStruct((B, 2, C), jnp.float32),
        grid_spec=pltpu.PrefetchScalarGridSpec(
            num_scalar_prefetch=0,
            grid=(B, ntq),
            in_specs=[pl.BlockSpec((1, tq, C), lambda b, i: (b, i, 0))],
            out_specs=pl.BlockSpec((1, 2, C), lambda b, i: (b, 0, 0)),
            scratch_shapes=[pltpu.VMEM((2, C), jnp.float32)],
        ),
        compiler_params=pltpu.CompilerParams(
            dimension_semantics=("parallel", "arbitrary"),
            vmem_limit_bytes=budget),
    )(x_tok)

    # Tiny group pooling + affine fold in plain JAX (replaces the old (2,C)@(C,C)
    # matmul and the gmat input).  Variance via E[x^2]-mean^2, clamped >= 0.
    mom = sums / float(N)                                       # (B, 2, C)
    grp = mom.reshape(B, 2, NUM_GROUPS, gs).mean(axis=-1)       # (B, 2, G)
    mean_g = grp[:, 0]
    var_g = jnp.maximum(grp[:, 1] - mean_g * mean_g, 0.0)
    inv_g = jax.lax.rsqrt(var_g + EPS)
    mean = jnp.repeat(mean_g, gs, axis=-1)                      # (B, C)
    inv = jnp.repeat(inv_g, gs, axis=-1)                        # (B, C)
    scale_c = inv * gamma[None, :]
    shift_c = beta[None, :] - mean * scale_c
    ss = jnp.stack([scale_c, shift_c], axis=1)                  # (B, 2, C)

    # ---- stage 2: normalize + fused QKV (bf16 outputs for the MXU) ----
    q, k, v = pl.pallas_call(
        functools.partial(_norm_qkv_kernel, channels=C),
        out_shape=(jax.ShapeDtypeStruct((B, N, C), jnp.bfloat16),
                   jax.ShapeDtypeStruct((B, N, C), jnp.bfloat16),
                   jax.ShapeDtypeStruct((B, N, C), jnp.bfloat16)),
        grid_spec=pltpu.PrefetchScalarGridSpec(
            num_scalar_prefetch=0,
            grid=(B, ntq),
            in_specs=[
                pl.BlockSpec((1, tq, C), lambda b, i: (b, i, 0)),    # x tokens
                pl.BlockSpec((1, 2, C), lambda b, i: (b, 0, 0)),     # scale/shift
                _const_spec((C, 3 * C)),                             # wqkv (single-buffered)
                _const_spec((1, 3 * C)),                             # bqkv
            ],
            out_specs=(
                pl.BlockSpec((1, tq, C), lambda b, i: (b, i, 0)),
                pl.BlockSpec((1, tq, C), lambda b, i: (b, i, 0)),
                pl.BlockSpec((1, tq, C), lambda b, i: (b, i, 0)),
            ),
        ),
        compiler_params=pltpu.CompilerParams(
            dimension_semantics=("parallel", "parallel"),
            vmem_limit_bytes=budget),
    )(x_tok, ss, wqkv, bqkv)

    # ---- stage 3: flash attention + output projection + residual ----
    x_res = x_tok.astype(jnp.bfloat16)          # bf16 residual read; add stays f32
    fits, tkv = _stage3_resident_plan(N, C, tq, budget)

    if fits:
        num_kv_tiles = N // tkv
        out_tok = pl.pallas_call(
            functools.partial(_flash_resident_kernel, kv_tile=tkv,
                              num_kv_tiles=num_kv_tiles, use_bf16_exp=use_bf16_exp),
            out_shape=jax.ShapeDtypeStruct((B, N, C), jnp.float32),
            grid_spec=pltpu.PrefetchScalarGridSpec(
                num_scalar_prefetch=0,
                grid=(B, ntq),
                in_specs=[
                    pl.BlockSpec((1, tq, C), lambda b, qi: (b, qi, 0)),  # residual (bf16)
                    pl.BlockSpec((1, tq, C), lambda b, qi: (b, qi, 0)),  # q tile
                    pl.BlockSpec((1, N, C), lambda b, qi: (b, 0, 0)),    # K resident per batch
                    pl.BlockSpec((1, N, C), lambda b, qi: (b, 0, 0)),    # V resident per batch
                    _const_spec((C, C)),                                 # wp
                    _const_spec((1, C)),                                 # bp
                ],
                out_specs=pl.BlockSpec((1, tq, C), lambda b, qi: (b, qi, 0)),
                scratch_shapes=[
                    pltpu.VMEM((tq, 1), jnp.float32),   # running max m
                    pltpu.VMEM((tq, 1), jnp.float32),   # running denom l
                    pltpu.VMEM((tq, C), jnp.float32),   # unnormalized accumulator
                ],
            ),
            compiler_params=pltpu.CompilerParams(
                dimension_semantics=("parallel", "parallel"),
                vmem_limit_bytes=budget),
        )(x_res, q, k, v, wp, bp)
    else:
        # Fallback: stream key tiles from HBM, with a larger key tile (higher
        # arithmetic intensity) decoupled from the q tile.
        tk_s = _pick_tile(N, cap=1024)
        ntk = N // tk_s
        out_tok = pl.pallas_call(
            functools.partial(_flash_streamed_kernel, use_bf16_exp=use_bf16_exp),
            out_shape=jax.ShapeDtypeStruct((B, N, C), jnp.float32),
            grid_spec=pltpu.PrefetchScalarGridSpec(
                num_scalar_prefetch=0,
                grid=(B, ntq, ntk),
                in_specs=[
                    pl.BlockSpec((1, tq, C), lambda b, qi, ki: (b, qi, 0)),
                    pl.BlockSpec((1, tq, C), lambda b, qi, ki: (b, qi, 0)),
                    pl.BlockSpec((1, tk_s, C), lambda b, qi, ki: (b, ki, 0)),
                    pl.BlockSpec((1, tk_s, C), lambda b, qi, ki: (b, ki, 0)),
                    _const_spec((C, C)),
                    _const_spec((1, C)),
                ],
                out_specs=pl.BlockSpec((1, tq, C), lambda b, qi, ki: (b, qi, 0)),
                scratch_shapes=[
                    pltpu.VMEM((tq, 1), jnp.float32),
                    pltpu.VMEM((tq, 1), jnp.float32),
                    pltpu.VMEM((tq, C), jnp.float32),
                ],
            ),
            compiler_params=pltpu.CompilerParams(
                dimension_semantics=("parallel", "parallel", "arbitrary"),
                vmem_limit_bytes=budget),
        )(x_res, q, k, v, wp, bp)

    # (B, N, C) -> NCHW
    return jnp.transpose(out_tok.reshape(B, H, W, C), (0, 3, 1, 2))


# ----------------------------------------------------------------------------
# params / pure-JAX reference / test
# ----------------------------------------------------------------------------
def init_params(key, C):
    ks = jax.random.split(key, 8)
    s = 0.1
    return {
        "gn_weight": 1.0 + s * jax.random.normal(ks[0], (C,), jnp.float32),
        "gn_bias": s * jax.random.normal(ks[1], (C,), jnp.float32),
        "q_w": s * jax.random.normal(ks[2], (C, C, 1, 1), jnp.float32),
        "q_b": s * jax.random.normal(ks[3], (C,), jnp.float32),
        "k_w": s * jax.random.normal(ks[4], (C, C, 1, 1), jnp.float32),
        "k_b": s * jax.random.normal(ks[5], (C,), jnp.float32),
        "v_w": s * jax.random.normal(ks[6], (C, C, 1, 1), jnp.float32),
        "v_b": s * jax.random.normal(ks[7], (C,), jnp.float32),
        "proj_w": s * jax.random.normal(jax.random.fold_in(key, 100), (C, C, 1, 1), jnp.float32),
        "proj_b": s * jax.random.normal(jax.random.fold_in(key, 101), (C,), jnp.float32),
    }


def reference(x, p):
    """Pure-JAX f32 reference mirroring the PyTorch forward (NCHW)."""
    B, C, H, W = x.shape
    N = H * W
    gs = C // NUM_GROUPS
    xg = x.reshape(B, NUM_GROUPS, gs, H, W)
    mu = xg.mean(axis=(2, 3, 4), keepdims=True)
    var = xg.var(axis=(2, 3, 4), keepdims=True)
    hn = ((xg - mu) / jnp.sqrt(var + EPS)).reshape(B, C, H, W)
    hn = hn * p["gn_weight"][None, :, None, None] + p["gn_bias"][None, :, None, None]

    def conv1x1(h, w, b):
        return jnp.einsum("oc,bchw->bohw", w[:, :, 0, 0], h) + b[None, :, None, None]

    q = conv1x1(hn, p["q_w"], p["q_b"]).reshape(B, C, N).transpose(0, 2, 1)   # (B, N, C)
    k = conv1x1(hn, p["k_w"], p["k_b"]).reshape(B, C, N)                      # (B, C, N)
    v = conv1x1(hn, p["v_w"], p["v_b"]).reshape(B, C, N)                      # (B, C, N)
    w_ = jnp.einsum("bij,bjk->bik", q, k) * (float(C) ** (-0.5))              # (B, N, N)
    w_ = jax.nn.softmax(w_, axis=2)
    h_ = jnp.einsum("bij,bkj->bik", v, w_).reshape(B, C, H, W)                # v @ w_^T
    h_ = conv1x1(h_, p["proj_w"], p["proj_b"])
    return x + h_


if __name__ == "__main__":
    key = jax.random.PRNGKey(0)
    B, C, H, W = 2, 128, 8, 8         # C multiple of 128 -> lane-dense tiles
    kx, kp = jax.random.split(key)
    x = jax.random.normal(kx, (B, C, H, W), jnp.float32)
    params = init_params(kp, C)

    out = spatial_self_attention(x, params)
    out = jax.block_until_ready(out)

    ref = reference(x, params)
    assert out.shape == (B, C, H, W)
    # bf16 matmul operands / bf16 exp / bf16 residual read vs an all-f32 reference
    err = float(jnp.max(jnp.abs(out - ref)))
    assert jnp.allclose(out, ref, atol=3e-2, rtol=3e-2), (
        "mismatch vs reference: max abs diff = %f" % err)
    print("KERNEL_OK")
</pallas_src>

<mosaic_0001>
module attributes {stable_mosaic.version = 11 : i64} {
  func.func @_stats_kernel(%arg0: i32, %arg1: i32, %arg2: memref<1x64x128xf32, #tpu.memory_space<vmem>>, %arg3: memref<1x2x128xf32, #tpu.memory_space<vmem>>, %arg4: memref<2x128xf32, #tpu.memory_space<vmem>>) attributes {dimension_semantics = [#tpu.dimension_semantics<parallel>, #tpu.dimension_semantics<arbitrary>], iteration_bounds = array<i64: 2, 1>, scalar_prefetch = 0 : i64, scratch_operands = 1 : i64, tpu.core_type = #tpu.core_type<tc>, window_params = [{transform_indices = @transform_0, window_bounds = array<i64: 1, 64, 128>}, {transform_indices = @transform_1, window_bounds = array<i64: 1, 2, 128>}]} {
    %c0_i32 = arith.constant 0 : i32
    %0 = arith.cmpi eq, %arg1, %c0_i32 : i32
    %1 = arith.extui %0 : i1 to i32
    %c0_i32_0 = arith.constant 0 : i32
    %2 = arith.cmpi ne, %1, %c0_i32_0 : i32
    scf.if %2 {
      %cst_10 = arith.constant 0.000000e+00 : f32
      %17 = vector.broadcast %cst_10 : f32 to vector<2x128xf32>
      %c0_11 = arith.constant 0 : index
      %c0_12 = arith.constant 0 : index
      %18 = vector.load %arg4[%c0_11, %c0_12] : memref<2x128xf32, #tpu.memory_space<vmem>>, vector<2x128xf32>
      tpu.vector_store %arg4[%c0_11, %c0_12], %17 {strides = array<i32>} : memref<2x128xf32, #tpu.memory_space<vmem>>, vector<2x128xf32>,
    } else {
    }
    %c0 = arith.constant 0 : index
    %c0_1 = arith.constant 0 : index
    %c0_2 = arith.constant 0 : index
    %3 = vector.load %arg2[%c0, %c0_1, %c0_2] : memref<1x64x128xf32, #tpu.memory_space<vmem>>, vector<1x64x128xf32>
    %4 = vector.shape_cast %3 : vector<1x64x128xf32> to vector<64x128xf32>
    %cst = arith.constant dense<0.000000e+00> : vector<128xf32>
    %5 = vector.multi_reduction <add>, %4, %cst [0] : vector<64x128xf32> to vector<128xf32>
    %6 = vector.shape_cast %5 : vector<128xf32> to vector<1x128xf32>
    %7 = arith.mulf %4, %4 : vector<64x128xf32>
    %cst_3 = arith.constant dense<0.000000e+00> : vector<128xf32>
    %8 = vector.multi_reduction <add>, %7, %cst_3 [0] : vector<64x128xf32> to vector<128xf32>
    %9 = vector.shape_cast %8 : vector<128xf32> to vector<1x128xf32>
    %c0_4 = arith.constant 0 : index
    %c0_5 = arith.constant 0 : index
    %10 = vector.load %arg4[%c0_4, %c0_5] : memref<2x128xf32, #tpu.memory_space<vmem>>, vector<2x128xf32>
    %11 = tpu.concatenate %6, %9 in 0 : vector<1x128xf32>, vector<1x128xf32> -> vector<2x128xf32>
    %12 = arith.addf %10, %11 : vector<2x128xf32>
    %c0_6 = arith.constant 0 : index
    %c0_7 = arith.constant 0 : index
    %13 = vector.load %arg4[%c0_6, %c0_7] : memref<2x128xf32, #tpu.memory_space<vmem>>, vector<2x128xf32>
    tpu.vector_store %arg4[%c0_6, %c0_7], %12 {strides = array<i32>} : memref<2x128xf32, #tpu.memory_space<vmem>>, vector<2x128xf32>,
    %c0_i32_8 = arith.constant 0 : i32
    %14 = arith.cmpi eq, %arg1, %c0_i32_8 : i32
    %15 = arith.extui %14 : i1 to i32
    %c0_i32_9 = arith.constant 0 : i32
    %16 = arith.cmpi ne, %15, %c0_i32_9 : i32
    scf.if %16 {
      %c0_10 = arith.constant 0 : index
      %c0_11 = arith.constant 0 : index
      %17 = vector.load %arg4[%c0_10, %c0_11] : memref<2x128xf32, #tpu.memory_space<vmem>>, vector<2x128xf32>
      %c0_12 = arith.constant 0 : index
      %c0_13 = arith.constant 0 : index
      %c0_14 = arith.constant 0 : index
      %18 = vector.load %arg3[%c0_12, %c0_13, %c0_14] : memref<1x2x128xf32, #tpu.memory_space<vmem>>, vector<1x2x128xf32>
      %19 = vector.shape_cast %18 : vector<1x2x128xf32> to vector<2x128xf32>
      %20 = vector.shape_cast %17 : vector<2x128xf32> to vector<1x2x128xf32>
      tpu.vector_store %arg3[%c0_12, %c0_13, %c0_14], %20 {strides = array<i32>} : memref<1x2x128xf32, #tpu.memory_space<vmem>>, vector<1x2x128xf32>,
    } else {
    }
    return
  }
  func.func @transform_0(%arg0: i32, %arg1: i32) -> (i32, i32, i32) {
    %c0_i32 = arith.constant 0 : i32
    %c0_i32_0 = arith.constant 0 : i32
    return %arg0, %arg1, %c0_i32 : i32, i32, i32
  }
  func.func @transform_1(%arg0: i32, %arg1: i32) -> (i32, i32, i32) {
    %c0_i32 = arith.constant 0 : i32
    %c0_i32_0 = arith.constant 0 : i32
    %c0_i32_1 = arith.constant 0 : i32
    return %arg0, %c0_i32, %c0_i32_0 : i32, i32, i32
  }
}

</mosaic_0001>

<bundles_post_ra>
// kernel: tpu_custom_call.1
= control target key start
LH: loop header
LB: loop body
LE: loop exit
PB: predicated region body
PF: predicated region fallthrough
CT: control target
= control target key end

     0   :  { %6 = vsyncpa [#allocation4], 0  ;;  %s648_s0 = inlined_call_operand.hbm [shape: f32[2,64,128], index: 0, kind: input, shape index: {}]   ;;  %s649_s1 = inlined_call_operand.hbm [shape: f32[2,2,128], index: 1, kind: output, shape index: {}]  }
   0x1   :  { %8 = vsyncpa [#allocation4 + $0x1], 0 }
   0x2   :  { %9 = vsyncpa [#allocation5], 0 }
   0x3   :  { %11 = vsyncpa [#allocation5 + $0x1], 0  ;;  %s509_s6 = smov 0   ;;  %s511_s7 = smov 0  }
   0x4   :  { %s513_s8 = smov 0   ;;  %s515_s9 = smov 0  }
   0x5   :  { %s517_s10 = smov 0   ;;  %s519_s11 = smov 0  }
   0x6 LB: > { %s304_s12 = sadd.s32 4294967295, %s492_s11   ;;  %s305_s13 = sadd.s32 4294967294, %s492_s11   ;;  %s492_s11 = sphi %s519_s11, %s17_s11   ;;  %s488_s10 = sphi %s517_s10, %s660_s10   ;;  %s484_s9 = sphi %s515_s9, %s659_s9   ;;  %s480_s8 = sphi %s513_s8, %s658_s8   ;;  %s476_s7 = sphi %s511_s7, %s657_s7   ;;  %s472_s6 = sphi %s509_s6, %s656_s6  }
   0x7   : > { %s29_s14 = sadd.s32 1, %s488_s10  ;;  %s38_s15 = sadd.s32 1, %s480_s8 }
   0x8   : > { %p31_p0 = scmp.ge.s32.totalorder %s29_s14, 2  ;;  %p45_p1 = scmp.ne.s32.totalorder %s480_s8, %s476_s7 }
   0x9   : > { %p46_p2 = scmp.eq.s32.totalorder %s492_s11, 0  ;;  %p51_p3 = scmp.ne.s32.totalorder %s476_s7, %s472_s6 }
   0xa   : > { %s662_s14 = smov (%p31_p0, %s29_s14), 0  ;;  %p52_p5 = scmp.eq.s32.totalorder %s304_s12, 0 }
   0xb   : > { %p550_p4 = por %p46_p2, %p45_p1  ;;  %s33_s17 = ssub.s32 %s488_s10, %s662_s14 }
   0xc   : > { %p75_p6 = scmp.eq.s32.totalorder %s304_s12, 1  ;;  %p36_p7 = scmp.eq.s32.totalorder %s33_s17, 0 }
   0xd   : > { %p556_p8 = por %p52_p5, %p51_p3  ;;  %p81_p10 = scmp.eq.s32.totalorder %s305_s13, 1 }
   0xe   : > { %p560_p9 = por %p75_p6, %p45_p1  ;;  %p331_p13 = scmp.lt.s32.totalorder %s492_s11, 2 }
   0xf   : > { %s565_s20 = scalar_select %p36_p7, %s480_s8, %s38_s15  }
  0x10   : > { %p567_p11 = por %p81_p10, %p51_p3  ;;  %s101_s22 = sand.u32 1, %s480_s8  }
  0x11   : > { %s308_s23 = sshll.u32 %s101_s22, 6  ;;  %s318_s24 = sshll.u32 %s488_s10, 10 }
  0x12   : > { %s113_s27 = scalar_lea.hbm %s648_s0, %s318_s24  ;;  %s105_s28 = scalar_lea.vmem [#allocation3], %s308_s23 }
  0x13   : > { %s114_s29 = sshll.u32 %s105_s28, 4  ;;  %p580_p0 = pnand %p331_p13, %p550_p4  ;;  %s115_s29 = int_to_ptr.vmem [resolvable:$true] %s114_s29 }
  0x14   : > { %p311_p1 = scmp.ge.s32.totalorder %s492_s11, 1  ;;  %s102_s2 = scalar_lea.sflag [#allocation4], %s101_s22 }
  0x15   : > { %p386_p2 = pneg %p580_p0  ;;  %s397_s3 = scalar_lea.vmem %s115_s29, 1024 }
  0x16   : > { %p398_p3 = scmp.ne.s32.totalorder %s115_s29, %s397_s3  ;;  %s494_s4 = smov [#allocation3]  }
  0x17   : > { %s402_s5 = sshll.u32 %s494_s4, 4  ;;  %s403_s5 = int_to_ptr.vmem [resolvable:$false] %s402_s5 }
  0x18   : > { %p400_p5 = pnand %p398_p3, %p386_p2  ;;  %s404_s12 = scalar_lea.vmem %s403_s5, 2048 }
  0x19   : > { %p405_p7 = scmp.lt.s32.totalorder %s115_s29, %s403_s5  ;;  %p406_p10 = scmp.lt.s32.totalorder %s404_s12, %s397_s3 }
  0x1a   : > { %p401_p6 = pneg %p400_p5 }
  0x1b   : > { %p407_p12 = por %p406_p10, %p405_p7 }
  0x1d   : > { %p408_p4 = pnand %p407_p12, %p401_p6 }
  0x1f   : > { %411 = shalt.err (!%p408_p4)
}
  0x20   : > { %s495_s13 = smov 128   ;;  %s496_s15 = smov 8  }
  0x21   : > { %326 = dma.hbm_to_vmem [thread:$0]  (!%p580_p0), %s113_s27, 1024, %s115_s29, %s102_s2, %s495_s13, %s495_s13, %s496_s15  }
  0x22   : > { %p122_p13 = scmp.lt.s32.totalorder %s492_s11, 3 }
  0x24   : > { %p123_p2 = pnand %p311_p1, %p122_p13 }
  0x25   : > { %s593_s16 = sand.u32 (!%p123_p2), 1, %s476_s7  }
  0x26   : > { %126 = sbr.rel (%p123_p2) target bundleno = 97 (0x61), region = 24  ;;  %s312_s17 = sshll.u32 (!%p123_p2), %s593_s16, 6 }
  0x27   : > { %s129_s22 = scalar_lea.sflag (!%p123_p2), [#allocation4], %s593_s16  ;;  %s132_s23 = scalar_lea.vmem (!%p123_p2), [#allocation3], %s312_s17 }
  0x2b   : > { %463 = dma.done.wait (%p556_p8), %s129_s22, 1024  }
  0x2c   : > { %465 = vsyncadd (%p556_p8), %s129_s22, 4294966272  ;;  %v497_v0 = vmov 0.0   ;;  %v157_v1 = vld [vmem:[%s132_s23] sm:$0xff]  ;;  %v158_v2 = vld [vmem:[%s132_s23 + $0x8] sm:$0xff]  ;;  %vm200_vm0 = vcmask 1040384   ;;  %s313_s18 = sshll.u32 %s593_s16, 1 }
  0x2d   : > { %156 = vst [vmem:[#allocation2] sm:$0x3] %v497_v0  ;;  %v159_v3 = vld [vmem:[%s132_s23 + $0x10] sm:$0xff]  ;;  %v160_v4 = vld [vmem:[%s132_s23 + $0x18] sm:$0xff]  ;;  %v165_v5 = vadd.f32 %v158_v2, %v157_v1  ;;  %v178_v6 = vmul.f32 %v157_v1, %v157_v1  ;;  %v179_v7 = vmul.f32 %v158_v2, %v158_v2  ;;  %v161_v9 = vld [vmem:[%s132_s23 + $0x20] sm:$0xff]  ;;  %s150_s24 = scalar_lea.vmem [#allocation6], %s313_s18 }
  0x2e   : > { %v180_v8 = vmul.f32 %v159_v3, %v159_v3  ;;  %v181_v11 = vmul.f32 %v160_v4, %v160_v4  ;;  %v162_v13 = vld [vmem:[%s132_s23 + $0x28] sm:$0xff]  ;;  %v182_v15 = vmul.f32 %v161_v9, %v161_v9  ;;  %v163_v17 = vld [vmem:[%s132_s23 + $0x30] sm:$0xff]  ;;  %v164_v21 = vld [vmem:[%s132_s23 + $0x38] sm:$0xff]  ;;  %s223_s25 = sshll.u32 %s150_s24, 4  ;;  %s315_s26 = sshll.u32 %s484_s9, 5  ;;  %s603_s25 = int_to_ptr.vmem [resolvable:$true] %s223_s25 }
  0x2f   : > { %v166_v10 = vadd.f32 %v165_v5, %v159_v3  ;;  %v186_v12 = vadd.f32 %v179_v7, %v178_v6  ;;  %v183_v19 = vmul.f32 %v162_v13, %v162_v13  ;;  %v184_v23 = vmul.f32 %v163_v17, %v163_v17  ;;  %s221_s29 = scalar_lea.hbm %s649_s1, %s315_s26  ;;  %s210_s30 = scalar_lea.sflag [#allocation5], %s593_s16 }
  0x30   : > { %v185_v26 = vmul.f32 %v164_v21, %v164_v21  ;;  %s412_s2 = scalar_lea.vmem %s603_s25, 32  ;;  %s498_s3 = smov [#allocation6]  }
  0x31   : > { %v167_v14 = vadd.f32 %v166_v10, %v160_v4  ;;  %v187_v16 = vadd.f32 %v186_v12, %v180_v8  ;;  %p413_p8 = scmp.ne.s32.totalorder %s603_s25, %s412_s2  ;;  %s416_s4 = sshll.u32 %s498_s3, 4  ;;  %s417_s4 = int_to_ptr.vmem [resolvable:$false] %s416_s4 }
  0x32   : > { %s418_s9 = scalar_lea.vmem %s417_s4, 64  ;;  %p419_p1 = scmp.lt.s32.totalorder %s603_s25, %s417_s4 }
  0x33   : > { %v168_v18 = vadd.f32 %v167_v14, %v161_v9  ;;  %v188_v20 = vadd.f32 %v187_v16, %v181_v11  ;;  %p414_p12 = pnand %p413_p8, %p560_p9  ;;  %p420_p3 = scmp.lt.s32.totalorder %s418_s9, %s412_s2 }
  0x34   : > { %v199_v43 = vld [vmem:[#allocation2] sm:$0x3] }
  0x35   : > { %v169_v22 = vadd.f32 %v168_v18, %v162_v13  ;;  %v189_v24 = vadd.f32 %v188_v20, %v182_v15  ;;  %p415_p0 = pneg %p414_p12  ;;  %p421_p5 = por %p420_p3, %p419_p1 }
  0x37   : > { %v170_v25 = vadd.f32 %v169_v22, %v163_v17  ;;  %v190_v27 = vadd.f32 %v189_v24, %v183_v19  ;;  %p422_p6 = pnand %p421_p5, %p415_p0 }
  0x39   : > { %v171_v28 = vadd.f32 %v170_v25, %v164_v21  ;;  %v191_v29 = vadd.f32 %v190_v27, %v184_v23 }
  0x3b   : > { %v172_v30 = vrot.slane %v171_v28, 4  ;;  %v192_v31 = vadd.f32 %v191_v29, %v185_v26 }
  0x3d   : > { %v173_v32 = vadd.f32 %v172_v30, %v171_v28  ;;  %v193_v33 = vrot.slane %v192_v31, 4 }
  0x3f   : > { %v174_v34 = vrot.slane %v173_v32, 2  ;;  %v194_v35 = vadd.f32 %v193_v33, %v192_v31 }
  0x41   : > { %v175_v36 = vadd.f32 %v174_v34, %v173_v32  ;;  %v195_v37 = vrot.slane %v194_v35, 2 }
  0x43   : > { %v176_v38 = vrot.slane %v175_v36, 1  ;;  %v196_v39 = vadd.f32 %v195_v37, %v194_v35 }
  0x45   : > { %v177_v40 = vadd.f32 %v176_v38, %v175_v36  ;;  %v197_v41 = vrot.slane %v196_v39, 1 }
  0x47   : > { %v198_v42 = vadd.f32 %v197_v41, %v196_v39 }
  0x49   : > { %v201_v44 = vsel %vm200_vm0, %v177_v40, %v198_v42 }
  0x4a   : > { %v202_v45 = vadd.f32 %v201_v44, %v199_v43 }
  0x4c   : > { %203 = vst [vmem:[#allocation2] sm:$0x3] %v202_v45 }
  0x53   : > { %v207_v46 = vld [vmem:[#allocation2] sm:$0x3] }
  0x54   : > { %208 = vst [vmem:[%s150_s24] sm:$0x3] %v207_v46 }
  0x55   : > { %425 = shalt.err (!%p422_p6)
}
  0x56   : > { %s426_s5 = scalar_lea.hbm %s221_s29, 32  ;;  %s430_s15 = scalar_lea.hbm %s649_s1, 64 }
  0x57   : > { %p427_p7 = scmp.ne.s32.totalorder %s221_s29, %s426_s5  ;;  %p431_p13 = scmp.lt.s32.totalorder %s221_s29, %s649_s1 }
  0x58   : > { %p432_p2 = scmp.lt.s32.totalorder %s430_s15, %s426_s5 }
  0x59   : > { %p428_p10 = pnand %p427_p7, %p560_p9 }
  0x5a   : > { %p433_p8 = por %p432_p2, %p431_p13 }
  0x5b   : > { %p429_p4 = pneg %p428_p10 }
  0x5d   : > { %p434_p12 = pnand %p433_p8, %p429_p4 }
  0x5f   : > { %437 = shalt.err (!%p434_p12)
}
  0x60   : > { %321 = dma.vmem_to_hbm [thread:$0]  (%p560_p9), %s603_s25, 32, %s221_s29, %s210_s30  }
  0x61 PF: > { %s235_s22 = sand.u32 1, %s472_s6   ;;  %p655_p0 = scmp.ge.s32.totalorder %s492_s11, 2 }
  0x62   : > { %s236_s23 = scalar_lea.sflag [#allocation5], %s235_s22 }
  0x63   : > { %p328_p1 = pnand %p655_p0, %p567_p11 }
  0x65   : > { %p329_p3 = pneg %p328_p1 }
  0x67   : > { %467 = dma.done.wait (%p329_p3), %s236_s23, 32  }
  0x68   : > { %469 = vsyncadd (%p329_p3), %s236_s23, 4294967264  ;;  %s17_s11 = sadd.s32 1, %s492_s11   ;;  %s656_s6 = smov %s476_s7 }
  0x69   : > { %p14_p5 = scmp.ge.s32.totalorder %s17_s11, 4   ;;  %s657_s7 = smov %s480_s8 }
  0x6a   : > { %s658_s8 = smov %s565_s20  ;;  %s659_s9 = smov %s488_s10 }
  0x6b   : > { %s660_s10 = smov %s662_s14  ;;  %16 = sbr.rel (!%p14_p5) target bundleno = 6 (0x6), region = 77 }
  0x70   :  { %241 = vsyncpa [#allocation4], 1 }
  0x71   :  { %243 = vsyncpa [#allocation4 + $0x1], 1 }
  0x72   :  { %244 = vsyncpa [#allocation5], 1 }
  0x73   :  { %246 = vsyncpa [#allocation5 + $0x1], 1 }

</bundles_post_ra>
